<compile_context>
chip_gen: v7x
topology: tpu7x:2x2x1
jax: 0.10.0
libtpu: 0.0.40
codegen_flags: <defaults>
</compile_context>

<pallas_src>
import jax
import jax.numpy as jnp
from jax.experimental import pallas as pl
from jax.experimental.pallas import tpu as pltpu


def _g1_sub1_block_kernel(x_ref, s_ref, inv_ref, out_ref):
    # x_ref:   (TM, D) f32  rows of the embedding table (aliased with out_ref)
    # s_ref:   (1,  D) f32  S = sum of the N sub-block rows (precomputed)
    # inv_ref: (TM, 1) f32  1 / (1 + degree) per row       (precomputed)
    x = x_ref[...]
    s = s_ref[...]
    inv = inv_ref[...]
    new = x + s                               # broadcast (1,D) over rows
    out_ref[...] = new * (1.0 - s * inv)      # (1,D)*(TM,1) -> (TM,D)


_TILE_CANDIDATES = (1024, 512, 256, 128, 64, 32, 16, 8)


def _pick_aligned_tile(n_rows, start_row):
    """Largest tile (multiple of 8) dividing both N and start_idx, else None."""
    for tm in _TILE_CANDIDATES:
        if n_rows % tm == 0 and start_row % tm == 0:
            return tm
    return None


def g1_sub1_update(all_node_embedding, adj, start_idx, num_nodes):
    """Returns all_node_embedding with rows [start_idx : start_idx+N] updated."""
    N = num_nodes
    total, D = all_node_embedding.shape
    emb = all_node_embedding

    # ---- cheap precompute in the wrapper (tiny, no kernel DMA of adjacency) ----
    deg = jnp.count_nonzero(adj, axis=1, keepdims=True).astype(emb.dtype)   # (N, 1)
    inv_sum = 1.0 / (1.0 + deg)                                             # (N, 1)
    x = jax.lax.dynamic_slice_in_dim(emb, start_idx, N, axis=0)             # (N, D)
    s_vec = jnp.sum(x, axis=0, keepdims=True).astype(emb.dtype)             # (1, D)

    tm = _pick_aligned_tile(N, start_idx)
    if tm is not None:
        # In-place path: output IS the full table (aliased); grid only visits the
        # blocks covering rows [start_idx, start_idx+N).  start_idx is a static
        # module constant; if it ever needs to be dynamic, prefetch it with
        # pltpu.PrefetchScalarGridSpec and read it in the index_map.
        start_block = start_idx // tm
        return pl.pallas_call(
            _g1_sub1_block_kernel,
            out_shape=jax.ShapeDtypeStruct((total, D), emb.dtype),
            grid=(N // tm,),
            in_specs=[
                pl.BlockSpec((tm, D), lambda i: (start_block + i, 0)),   # table rows
                pl.BlockSpec((1, D), lambda i: (0, 0)),                  # S (constant)
                pl.BlockSpec((tm, 1), lambda i: (i, 0)),                 # 1/(1+deg)
            ],
            out_specs=pl.BlockSpec((tm, D), lambda i: (start_block + i, 0)),
            input_output_aliases={0: 0},   # write updated rows back into the table
            compiler_params=pltpu.CompilerParams(
                dimension_semantics=("parallel",)),
        )(emb, s_vec, inv_sum)

    # Fallback (start_idx not tile-aligned): run the same tiled kernel on the sliced
    # block and scatter it back.  Still tiled / pipelined; pays one extra slice +
    # update of N rows (not the whole table).
    tm2 = next((t for t in _TILE_CANDIDATES if N % t == 0), N)
    new_block = pl.pallas_call(
        _g1_sub1_block_kernel,
        out_shape=jax.ShapeDtypeStruct((N, D), emb.dtype),
        grid=(N // tm2,),
        in_specs=[
            pl.BlockSpec((tm2, D), lambda i: (i, 0)),
            pl.BlockSpec((1, D), lambda i: (0, 0)),
            pl.BlockSpec((tm2, 1), lambda i: (i, 0)),
        ],
        out_specs=pl.BlockSpec((tm2, D), lambda i: (i, 0)),
        input_output_aliases={0: 0},
        compiler_params=pltpu.CompilerParams(
            dimension_semantics=("parallel",)),
    )(x, s_vec, inv_sum)
    return jax.lax.dynamic_update_slice_in_dim(emb, new_block, start_idx, axis=0)


def _reference(all_node_embedding, adj, start_idx, num_nodes):
    """Pure-JAX reference mirroring the intended PyTorch forward."""
    N = num_nodes
    x = jax.lax.dynamic_slice_in_dim(all_node_embedding, start_idx, N, axis=0)
    s_vec = jnp.sum(x, axis=0, keepdims=True)
    deg = jnp.sum((adj != 0).astype(jnp.float32), axis=1, keepdims=True)
    new = (x + s_vec) * (1.0 - s_vec / (1.0 + deg))
    return jax.lax.dynamic_update_slice_in_dim(all_node_embedding, new, start_idx, axis=0)


if __name__ == "__main__":
    # Lane-dense, tile-aligned example (main in-place path).
    D = 128            # embedding_dim (multiple of 128 -> lane-dense stores)
    start_idx = 128    # tile-aligned
    N = 256            # number_node_G1_sub1
    total = start_idx + N

    key = jax.random.PRNGKey(0)
    k_emb, k_adj = jax.random.split(key)
    all_node_embedding = jax.random.normal(k_emb, (total, D), dtype=jnp.float32)
    adj = (jax.random.uniform(k_adj, (N, N)) > 0.7).astype(jnp.float32)

    out = jax.block_until_ready(g1_sub1_update(all_node_embedding, adj, start_idx, N))
    ref = _reference(all_node_embedding, adj, start_idx, N)
    assert jnp.allclose(out, ref, atol=1e-4, rtol=1e-4), "aligned path mismatch"

    # Also exercise the non-tile-aligned fallback path at a tiny size.
    start2, N2 = 12, 16
    emb2 = jax.random.normal(jax.random.PRNGKey(1), (start2 + N2, D), dtype=jnp.float32)
    adj2 = (jax.random.uniform(jax.random.PRNGKey(2), (N2, N2)) > 0.5).astype(jnp.float32)
    out2 = jax.block_until_ready(g1_sub1_update(emb2, adj2, start2, N2))
    ref2 = _reference(emb2, adj2, start2, N2)
    assert jnp.allclose(out2, ref2, atol=1e-4, rtol=1e-4), "fallback path mismatch"

    print("KERNEL_OK")
</pallas_src>

<mosaic_0001>
module attributes {stable_mosaic.version = 11 : i64} {
  func.func @_g1_sub1_block_kernel(%arg0: i32, %arg1: memref<128x128xf32, #tpu.memory_space<vmem>>, %arg2: memref<1x128xf32, #tpu.memory_space<vmem>>, %arg3: memref<128x1xf32, #tpu.memory_space<vmem>>, %arg4: memref<128x128xf32, #tpu.memory_space<vmem>>) attributes {dimension_semantics = [#tpu.dimension_semantics<parallel>], iteration_bounds = array<i64: 2>, scalar_prefetch = 0 : i64, scratch_operands = 0 : i64, tpu.core_type = #tpu.core_type<tc>, window_params = [{transform_indices = @transform_0, window_bounds = array<i64: 128, 128>}, {pipeline_mode = #tpu.pipeline_mode<synchronous>, transform_indices = @transform_1, window_bounds = array<i64: 1, 128>}, {transform_indices = @transform_2, window_bounds = array<i64: 128, 1>}, {transform_indices = @transform_3, window_bounds = array<i64: 128, 128>}]} {
    %c0 = arith.constant 0 : index
    %c0_0 = arith.constant 0 : index
    %0 = vector.load %arg1[%c0, %c0_0] : memref<128x128xf32, #tpu.memory_space<vmem>>, vector<128x128xf32>
    %c0_1 = arith.constant 0 : index
    %c0_2 = arith.constant 0 : index
    %1 = vector.load %arg2[%c0_1, %c0_2] : memref<1x128xf32, #tpu.memory_space<vmem>>, vector<1x128xf32>
    %c0_3 = arith.constant 0 : index
    %c0_4 = arith.constant 0 : index
    %2 = vector.load %arg3[%c0_3, %c0_4] : memref<128x1xf32, #tpu.memory_space<vmem>>, vector<128x1xf32>
    %3 = vector.broadcast %1 : vector<1x128xf32> to vector<128x128xf32>
    %4 = arith.addf %0, %3 : vector<128x128xf32>
    %5 = vector.broadcast %1 : vector<1x128xf32> to vector<128x128xf32>
    %6 = vector.broadcast %2 : vector<128x1xf32> to vector<128x128xf32>
    %7 = arith.mulf %5, %6 : vector<128x128xf32>
    %cst = arith.constant 1.000000e+00 : f32
    %8 = vector.broadcast %cst : f32 to vector<128x128xf32>
    %9 = arith.subf %8, %7 : vector<128x128xf32>
    %10 = arith.mulf %4, %9 : vector<128x128xf32>
    %c0_5 = arith.constant 0 : index
    %c0_6 = arith.constant 0 : index
    %11 = vector.load %arg4[%c0_5, %c0_6] : memref<128x128xf32, #tpu.memory_space<vmem>>, vector<128x128xf32>
    tpu.vector_store %arg4[%c0_5, %c0_6], %10 {strides = array<i32>} : memref<128x128xf32, #tpu.memory_space<vmem>>, vector<128x128xf32>,
    return
  }
  func.func @transform_0(%arg0: i32) -> (i32, i32) {
    %c1_i32 = arith.constant 1 : i32
    %0 = arith.addi %c1_i32, %arg0 : i32
    %c0_i32 = arith.constant 0 : i32
    %c0_i32_0 = arith.constant 0 : i32
    return %0, %c0_i32 : i32, i32
  }
  func.func @transform_1(%arg0: i32) -> (i32, i32) {
    %c0_i32 = arith.constant 0 : i32
    %c0_i32_0 = arith.constant 0 : i32
    %c0_i32_1 = arith.constant 0 : i32
    return %c0_i32, %c0_i32_0 : i32, i32
  }
  func.func @transform_2(%arg0: i32) -> (i32, i32) {
    %c0_i32 = arith.constant 0 : i32
    %c0_i32_0 = arith.constant 0 : i32
    return %arg0, %c0_i32 : i32, i32
  }
  func.func @transform_3(%arg0: i32) -> (i32, i32) {
    %c1_i32 = arith.constant 1 : i32
    %0 = arith.addi %c1_i32, %arg0 : i32
    %c0_i32 = arith.constant 0 : i32
    %c0_i32_0 = arith.constant 0 : i32
    return %0, %c0_i32 : i32, i32
  }
}

</mosaic_0001>

<bundles_post_ra>
// kernel: tpu_custom_call.1
= control target key start
LH: loop header
LB: loop body
LE: loop exit
PB: predicated region body
PF: predicated region fallthrough
CT: control target
= control target key end

     0   :  { %8 = vsyncpa [#allocation3], 0  ;;  %s962_s0 = inlined_call_operand.hbm [shape: f32[384,128], index: 0, kind: input, shape index: {}, may-alias: {0,3}]   ;;  %s963_s1 = inlined_call_operand.vmem [shape: f32[1,128], index: 1, kind: input, shape index: {}]   ;;  %s964_s2 = inlined_call_operand.vmem [shape: f32[256,1], index: 2, kind: input, shape index: {}]   ;;  %s965_s3 = inlined_call_operand.hbm [shape: f32[384,128], index: 3, kind: output, shape index: {}, may-alias: {0,3}]  }
   0x1   :  { %10 = vsyncpa [#allocation3 + $0x1], 0 }
   0x2   :  { %11 = vsyncpa [#allocation4], 0 }
   0x3   :  { %13 = vsyncpa [#allocation4 + $0x1], 0  ;;  %s716_s12 = smov 0   ;;  %s718_s13 = smov 0  }
   0x4   :  { %s720_s14 = smov 0   ;;  %s722_s15 = smov 0  }
   0x5 LB: > { %s737_s16 = sadd.s32 4294967295, %s687_s15   ;;  %s521_s17 = sadd.s32 4294967294, %s687_s15   ;;  %s687_s15 = sphi %s722_s15, %s980_s15   ;;  %s683_s14 = sphi %s720_s14, %s979_s14   ;;  %s679_s13 = sphi %s718_s13, %s978_s13   ;;  %s675_s12 = sphi %s716_s12, %s977_s12  }
   0x6   : > { %s741_s18 = sadd.s32 1, %s687_s15   ;;  %s28_s19 = sadd.s32 1, %s683_s14 }
   0x7   : > { %s24_s20 = sadd.s32 1, %s741_s18  ;;  %p35_p0 = scmp.ne.s32.totalorder %s683_s14, %s679_s13 }
   0x8   : > { %s25_s21 = ssub.s32 %s741_s18, %s24_s20  ;;  %p36_p1 = scmp.eq.s32.totalorder %s687_s15, 0 }
   0x9   : > { %p26_p2 = scmp.eq.s32.totalorder %s25_s21, 0  ;;  %p41_p3 = scmp.ne.s32.totalorder %s679_s13, %s675_s12 }
   0xa   : > { %p751_p4 = por %p36_p1, %p35_p0  ;;  %p42_p5 = scmp.eq.s32.totalorder %s737_s16, 0 }
   0xb   : > { %s757_s23 = scalar_select %p26_p2, %s683_s14, %s28_s19  }
   0xc   : > { %p759_p6 = por %p42_p5, %p41_p3  ;;  %p114_p7 = scmp.eq.s32.totalorder %s737_s16, 1 }
   0xd   : > { %p120_p8 = scmp.eq.s32.totalorder %s521_s17, 1  ;;  %p548_p11 = scmp.lt.s32.totalorder %s687_s15, 2 }
   0xe   : > { %p765_p10 = por %p114_p7, %p35_p0  ;;  %s143_s27 = sand.u32 1, %s683_s14  }
   0xf   : > { %p770_p12 = por %p120_p8, %p41_p3  ;;  %s524_s28 = sshll.u32 %s143_s27, 7 }
  0x10   : > { %s969_s25 = scalar_select %p765_p10, 1, 0 }
  0x11   : > { %s970_s26 = scalar_select %p770_p12, 1, 0 }
  0x12   : > { %s525_s29 = sshll.u32 %s687_s15, 11  ;;  %s147_s6 = scalar_lea.vmem [#allocation2], %s524_s28 }
  0x13   : > { %s465_s5 = scalar_lea.hbm %s962_s0, %s525_s29  ;;  %s155_s7 = sshll.u32 %s147_s6, 4  ;;  %s781_s7 = int_to_ptr.vmem [resolvable:$true] %s155_s7 }
  0x14   : > { %s779_s8 = scalar_lea.hbm %s465_s5, 2048  ;;  %p785_p13 = pnand %p548_p11, %p751_p4 }
  0x15   : > { %s791_s10 = scalar_lea.sflag [#allocation3], %s143_s27  ;;  %s619_s11 = scalar_lea.hbm %s465_s5, 4096 }
  0x16   : > { %p590_p2 = scmp.ne.s32.totalorder %s779_s8, %s619_s11  ;;  %p591_p3 = pneg %p785_p13 }
  0x17   : > { %s594_s20 = scalar_lea.hbm %s962_s0, 6144  ;;  %p595_p4 = scmp.lt.u32.totalorder %s779_s8, %s962_s0 }
  0x18   : > { %p592_p5 = pnand %p591_p3, %p590_p2  ;;  %p596_p8 = scmp.lt.u32.totalorder %s594_s20, %s619_s11 }
  0x19   : > { %p598_p9 = scmp.lt.u32.totalorder %s619_s11, %s779_s8 }
  0x1a   : > { %p593_p7 = pneg %p592_p5  ;;  %p597_p11 = por %p596_p8, %p595_p4 }
  0x1c   : > { %p599_p0 = por %p598_p9, %p597_p11 }
  0x1e   : > { %p600_p1 = pnand %p599_p0, %p593_p7 }
  0x20   : > { %603 = shalt.err (!%p600_p1)
}
  0x21   : > { %s604_s27 = scalar_lea.vmem %s781_s7, 2048  ;;  %s689_s28 = smov [#allocation2]  }
  0x22   : > { %p605_p2 = scmp.ne.s32.totalorder %s781_s7, %s604_s27  ;;  %s609_s29 = sshll.u32 %s689_s28, 4  ;;  %s610_s29 = int_to_ptr.vmem [resolvable:$false] %s609_s29 }
  0x23   : > { %s611_s30 = scalar_lea.vmem %s610_s29, 4096  ;;  %p612_p10 = scmp.lt.s32.totalorder %s781_s7, %s610_s29 }
  0x24   : > { %p607_p5 = pnand %p605_p2, %p591_p3  ;;  %p613_p4 = scmp.lt.s32.totalorder %s611_s30, %s604_s27 }
  0x26   : > { %p608_p12 = pneg %p607_p5  ;;  %p614_p8 = por %p613_p4, %p612_p10 }
  0x28   : > { %p615_p9 = pnand %p614_p8, %p608_p12 }
  0x2a   : > { %618 = shalt.err (!%p615_p9)
}
  0x2b   : > { %s690_s4 = smov 128   ;;  %s691_s5 = smov 8  }
  0x2c   : > { %543 = dma.hbm_to_vmem [thread:$0]  (!%p785_p13), %s779_s8, 2048, %s781_s7, %s791_s10, %s690_s4, %s690_s4, %s691_s5  }
  0x2d   : > { %p972_p0 = scmp.lt.s32.totalorder %s687_s15, 3  ;;  %p973_p1 = scmp.ge.s32.totalorder %s687_s15, 1 }
  0x2f   : > { %p173_p3 = pnand %p973_p1, %p972_p0 }
  0x30   : > { %s823_s6 = sand.u32 (!%p173_p3), 1, %s679_s13  }
  0x31   : > { %176 = sbr.rel (%p173_p3) target bundleno = 241 (0xf1), region = 32  ;;  %s527_s11 = sshll.u32 (!%p173_p3), %s823_s6, 7 }
  0x32   : > { %s179_s17 = scalar_lea.sflag (!%p173_p3), [#allocation3], %s823_s6  ;;  %s829_s19 = scalar_lea.vmem (!%p173_p3), [#allocation2], %s527_s11 }
  0x38   : > { %666 = dma.done.wait (%p759_p6), %s179_s17, 2048  }
  0x39   : > { %668 = vsyncadd (%p759_p6), %s179_s17, 4294965248  ;;  %s529_s7 = sshll.u32 %s737_s16, 4  ;;  %v692_v0 = vmov 0   ;;  %v222_v17 = vld [vmem:[%s829_s19 + $0x10] sm:$0xff]  ;;  %v843_v18 = vld [vmem:[%s963_s1] ss:$0 sm:$0xff] }
  0x3a   : > { %588 = vset.pattern.permute.xlu1 %v692_v0  ;;  %587 = vset.pattern.permute.xlu0 %v692_v0  ;;  %p213_p10 = scmp.lt.s32.totalorder %s529_s7, 31  ;;  %v220_v19 = vld [vmem:[%s829_s19] sm:$0xff]  ;;  %v261_v22 = vadd.f32 %v843_v18, %v222_v17  ;;  %v223_v26 = vld [vmem:[%s829_s19 + $0x18] sm:$0xff]  ;;  %v221_v27 = vld [vmem:[%s829_s19 + $0x8] sm:$0xff]  ;;  %s860_s22 = scalar_lea.vmem [#allocation5], %s527_s11 }
  0x3b   : > { %v259_v24 = vadd.f32 %v843_v18, %v220_v19  ;;  %v262_v31 = vadd.f32 %v843_v18, %v223_v26  ;;  %v260_v33 = vadd.f32 %v843_v18, %v221_v27  ;;  %v225_v38 = vld [vmem:[%s829_s19 + $0x28] sm:$0xff]  ;;  %v224_v39 = vld [vmem:[%s829_s19 + $0x20] sm:$0xff]  ;;  %v227_v50 = vld [vmem:[%s829_s19 + $0x38] sm:$0xff]  ;;  %s533_s27 = sshll.u32 %s737_s16, 11  ;;  %s434_s30 = sshll.u32 %s860_s22, 4  ;;  %s917_s30 = int_to_ptr.vmem [resolvable:$true] %s434_s30 }
  0x3c   : > { %s982_s7 = smov (!%p213_p10, %s529_s7), 31  ;;  %v264_v43 = vadd.f32 %v843_v18, %v225_v38  ;;  %v263_v45 = vadd.f32 %v843_v18, %v224_v39  ;;  %v226_v51 = vld [vmem:[%s829_s19 + $0x30] sm:$0xff]  ;;  %v266_v55 = vadd.f32 %v843_v18, %v227_v50  ;;  %v229_v62 = vld [vmem:[%s829_s19 + $0x48] sm:$0xff]  ;;  %v228_v63 = vld [vmem:[%s829_s19 + $0x40] sm:$0xff]  ;;  %s486_s29 = scalar_lea.hbm %s965_s3, %s533_s27 }
  0x3d   : > { %s530_s8 = sshll.u32 %s982_s7, 3  ;;  %v265_v57 = vadd.f32 %v843_v18, %v226_v51  ;;  %s915_s4 = scalar_lea.hbm %s486_s29, 2048 }
  0x3e   : > { %s216_s20 = scalar_lea.vmem %s964_s2, %s530_s8  ;;  %s420_s5 = scalar_lea.sflag [#allocation4], %s823_s6 }
  0x3f   : > { %v239_v1 = vld [vmem:[%s216_s20 + $0x10] sm:$0xff]  ;;  %v237_v2 = vld [vmem:[%s216_s20] sm:$0xff]  ;;  %v240_v3 = vld [vmem:[%s216_s20 + $0x18] sm:$0xff]  ;;  %s620_s11 = scalar_lea.vmem %s917_s30, 2048  ;;  %p974_p12 = scmp.ne.s32.totalorder %s969_s25, 0 }
  0x40   : > { %287 = vperm.xlu1 %588, %v239_v1   ;;  %277 = vperm.xlu0 %587, %v237_v2   ;;  %v238_v4 = vld [vmem:[%s216_s20 + $0x8] sm:$0xff]  ;;  %v241_v6 = vld [vmem:[%s216_s20 + $0x20] sm:$0xff]  ;;  %v244_v7 = vld [vmem:[%s216_s20 + $0x38] sm:$0xff]  ;;  %p621_p6 = scmp.ne.s32.totalorder %s917_s30, %s620_s11  ;;  %s693_s17 = smov [#allocation5]  }
  0x41   : > { %v242_v5 = vld [vmem:[%s216_s20 + $0x28] sm:$0xff]  ;;  %v243_v8 = vld [vmem:[%s216_s20 + $0x30] sm:$0xff]  ;;  %v245_v10 = vld [vmem:[%s216_s20 + $0x40] sm:$0xff] }
  0x42   : > { %v246_v9 = vld [vmem:[%s216_s20 + $0x48] sm:$0xff]  ;;  %v248_v11 = vld [vmem:[%s216_s20 + $0x58] sm:$0xff]  ;;  %v247_v12 = vld [vmem:[%s216_s20 + $0x50] sm:$0xff]  ;;  %p622_p13 = pnand %p621_p6, %p974_p12 }
  0x43   : > { %v250_v13 = vld [vmem:[%s216_s20 + $0x68] sm:$0xff]  ;;  %v249_v14 = vld [vmem:[%s216_s20 + $0x60] sm:$0xff]  ;;  %v252_v15 = vld [vmem:[%s216_s20 + $0x78] sm:$0xff] }
  0x44   : > { %292 = vperm.xlu1 %588, %v240_v3   ;;  %282 = vperm.xlu0 %587, %v238_v4   ;;  %v251_v16 = vld [vmem:[%s216_s20 + $0x70] sm:$0xff]  ;;  %v268_v3 = vadd.f32 %v843_v18, %v229_v62  ;;  %p623_p7 = pneg %p622_p13 }
  0x48   : > { %302 = vperm.xlu1 %588, %v242_v5   ;;  %297 = vperm.xlu0 %587, %v241_v6   ;;  %v267_v5 = vadd.f32 %v843_v18, %v228_v63 }
  0x4c   : > { %312 = vperm.xlu1 %588, %v244_v7   ;;  %307 = vperm.xlu0 %587, %v243_v8  }
  0x50   : > { %322 = vperm.xlu1 %588, %v246_v9   ;;  %317 = vperm.xlu0 %587, %v245_v10   ;;  %v231_v10 = vld [vmem:[%s829_s19 + $0x58] sm:$0xff] }
  0x54   : > { %332 = vperm.xlu1 %588, %v248_v11   ;;  %327 = vperm.xlu0 %587, %v247_v12   ;;  %v230_v11 = vld [vmem:[%s829_s19 + $0x50] sm:$0xff] }
  0x55   : > { %v269_v17 = vadd.f32 %v843_v18, %v230_v11 }
  0x58   : > { %342 = vperm.xlu1 %588, %v250_v13   ;;  %337 = vperm.xlu0 %587, %v249_v14  }
  0x5c   : > { %352 = vperm.xlu1 %588, %v252_v15   ;;  %347 = vperm.xlu0 %587, %v251_v16   ;;  %v270_v15 = vadd.f32 %v843_v18, %v231_v10 }
  0xbf   : > { %v288_v20 = vpop.permute.xlu1 %287  ;;  %v278_v21 = vpop.permute.xlu0 %277 }
  0xc0   : > { %v357_v23 = vmul.f32 %v843_v18, %v288_v20  ;;  %v355_v25 = vmul.f32 %v843_v18, %v278_v21 }
  0xc2   : > { %v373_v28 = vsub.f32 1.0, %v357_v23  ;;  %v371_v29 = vsub.f32 1.0, %v355_v25  ;;  %v233_v23 = vld [vmem:[%s829_s19 + $0x68] sm:$0xff] }
  0xc3   : > { %v293_v30 = vpop.permute.xlu1 %292  ;;  %v283_v32 = vpop.permute.xlu0 %282 }
  0xc4   : > { %v389_v34 = vmul.f32 %v373_v28, %v261_v22  ;;  %v387_v35 = vmul.f32 %v371_v29, %v259_v24  ;;  %v358_v36 = vmul.f32 %v843_v18, %v293_v30  ;;  %v356_v37 = vmul.f32 %v843_v18, %v283_v32  ;;  %v232_v24 = vld [vmem:[%s829_s19 + $0x60] sm:$0xff] }
  0xc5   : > { %v272_v28 = vadd.f32 %v843_v18, %v233_v23  ;;  %v271_v30 = vadd.f32 %v843_v18, %v232_v24 }
  0xc6   : > { %405 = vst [vmem:[%s860_s22 + $0x10] sm:$0xff] %v389_v34  ;;  %403 = vst [vmem:[%s860_s22] sm:$0xff] %v387_v35  ;;  %v374_v40 = vsub.f32 1.0, %v358_v36  ;;  %v372_v41 = vsub.f32 1.0, %v356_v37  ;;  %v235_v35 = vld [vmem:[%s829_s19 + $0x78] sm:$0xff]  ;;  %v234_v36 = vld [vmem:[%s829_s19 + $0x70] sm:$0xff]  ;;  %s624_s19 = sshll.u32 %s693_s17, 4  ;;  %s625_s19 = int_to_ptr.vmem [resolvable:$false] %s624_s19 }
  0xc7   : > { %v303_v42 = vpop.permute.xlu1 %302  ;;  %v298_v44 = vpop.permute.xlu0 %297  ;;  %s626_s7 = scalar_lea.vmem %s625_s19, 4096  ;;  %p627_p11 = scmp.lt.s32.totalorder %s917_s30, %s625_s19 }
  0xc8   : > { %v390_v46 = vmul.f32 %v374_v40, %v262_v31  ;;  %v388_v47 = vmul.f32 %v372_v41, %v260_v33  ;;  %v360_v48 = vmul.f32 %v843_v18, %v303_v42  ;;  %v359_v49 = vmul.f32 %v843_v18, %v298_v44  ;;  %p628_p2 = scmp.lt.s32.totalorder %s626_s7, %s620_s11 }
  0xc9   : > { %v274_v40 = vadd.f32 %v843_v18, %v235_v35  ;;  %v273_v42 = vadd.f32 %v843_v18, %v234_v36 }
  0xca   : > { %406 = vst [vmem:[%s860_s22 + $0x18] sm:$0xff] %v390_v46  ;;  %404 = vst [vmem:[%s860_s22 + $0x8] sm:$0xff] %v388_v47  ;;  %v376_v52 = vsub.f32 1.0, %v360_v48  ;;  %v375_v53 = vsub.f32 1.0, %v359_v49  ;;  %p629_p5 = por %p628_p2, %p627_p11 }
  0xcb   : > { %v313_v54 = vpop.permute.xlu1 %312  ;;  %v308_v56 = vpop.permute.xlu0 %307 }
  0xcc   : > { %v392_v58 = vmul.f32 %v376_v52, %v264_v43  ;;  %v391_v59 = vmul.f32 %v375_v53, %v263_v45  ;;  %v362_v60 = vmul.f32 %v843_v18, %v313_v54  ;;  %v361_v61 = vmul.f32 %v843_v18, %v308_v56  ;;  %p630_p4 = pnand %p629_p5, %p623_p7 }
  0xce   : > { %408 = vst [vmem:[%s860_s22 + $0x28] sm:$0xff] %v392_v58  ;;  %407 = vst [vmem:[%s860_s22 + $0x20] sm:$0xff] %v391_v59  ;;  %v378_v0 = vsub.f32 1.0, %v362_v60  ;;  %v377_v1 = vsub.f32 1.0, %v361_v61 }
  0xcf   : > { %v323_v2 = vpop.permute.xlu1 %322  ;;  %v318_v4 = vpop.permute.xlu0 %317 }
  0xd0   : > { %v394_v6 = vmul.f32 %v378_v0, %v266_v55  ;;  %v393_v7 = vmul.f32 %v377_v1, %v265_v57  ;;  %v364_v8 = vmul.f32 %v843_v18, %v323_v2  ;;  %v363_v9 = vmul.f32 %v843_v18, %v318_v4 }
  0xd2   : > { %410 = vst [vmem:[%s860_s22 + $0x38] sm:$0xff] %v394_v6  ;;  %409 = vst [vmem:[%s860_s22 + $0x30] sm:$0xff] %v393_v7  ;;  %v380_v12 = vsub.f32 1.0, %v364_v8  ;;  %v379_v13 = vsub.f32 1.0, %v363_v9 }
  0xd3   : > { %v333_v14 = vpop.permute.xlu1 %332  ;;  %v328_v16 = vpop.permute.xlu0 %327 }
  0xd4   : > { %v396_v19 = vmul.f32 %v380_v12, %v268_v3  ;;  %v395_v20 = vmul.f32 %v379_v13, %v267_v5  ;;  %v366_v21 = vmul.f32 %v843_v18, %v333_v14  ;;  %v365_v22 = vmul.f32 %v843_v18, %v328_v16 }
  0xd6   : > { %412 = vst [vmem:[%s860_s22 + $0x48] sm:$0xff] %v396_v19  ;;  %411 = vst [vmem:[%s860_s22 + $0x40] sm:$0xff] %v395_v20  ;;  %v382_v25 = vsub.f32 1.0, %v366_v21  ;;  %v381_v26 = vsub.f32 1.0, %v365_v22 }
  0xd7   : > { %v343_v27 = vpop.permute.xlu1 %342  ;;  %v338_v29 = vpop.permute.xlu0 %337 }
  0xd8   : > { %v398_v31 = vmul.f32 %v382_v25, %v270_v15  ;;  %v397_v32 = vmul.f32 %v381_v26, %v269_v17  ;;  %v368_v33 = vmul.f32 %v843_v18, %v343_v27  ;;  %v367_v34 = vmul.f32 %v843_v18, %v338_v29 }
  0xda   : > { %414 = vst [vmem:[%s860_s22 + $0x58] sm:$0xff] %v398_v31  ;;  %413 = vst [vmem:[%s860_s22 + $0x50] sm:$0xff] %v397_v32  ;;  %v384_v37 = vsub.f32 1.0, %v368_v33  ;;  %v383_v38 = vsub.f32 1.0, %v367_v34 }
  0xdb   : > { %v353_v39 = vpop.permute.xlu1 %352  ;;  %v348_v41 = vpop.permute.xlu0 %347 }
  0xdc   : > { %v400_v43 = vmul.f32 %v384_v37, %v272_v28  ;;  %v399_v44 = vmul.f32 %v383_v38, %v271_v30  ;;  %v370_v45 = vmul.f32 %v843_v18, %v353_v39  ;;  %v369_v46 = vmul.f32 %v843_v18, %v348_v41 }
  0xde   : > { %416 = vst [vmem:[%s860_s22 + $0x68] sm:$0xff] %v400_v43  ;;  %415 = vst [vmem:[%s860_s22 + $0x60] sm:$0xff] %v399_v44  ;;  %v386_v47 = vsub.f32 1.0, %v370_v45  ;;  %v385_v48 = vsub.f32 1.0, %v369_v46 }
  0xe0   : > { %v402_v49 = vmul.f32 %v386_v47, %v274_v40  ;;  %v401_v50 = vmul.f32 %v385_v48, %v273_v42 }
  0xe2   : > { %418 = vst [vmem:[%s860_s22 + $0x78] sm:$0xff] %v402_v49  ;;  %417 = vst [vmem:[%s860_s22 + $0x70] sm:$0xff] %v401_v50 }
  0xe3   : > { %633 = shalt.err (!%p630_p4)
}
  0xe4   : > { %s648_s8 = scalar_lea.hbm %s486_s29, 4096  ;;  %s638_s20 = scalar_lea.hbm %s965_s3, 6144 }
  0xe5   : > { %p635_p8 = scmp.ne.s32.totalorder %s915_s4, %s648_s8  ;;  %p639_p1 = scmp.lt.u32.totalorder %s915_s4, %s965_s3 }
  0xe6   : > { %p640_p3 = scmp.lt.u32.totalorder %s638_s20, %s648_s8  ;;  %p642_p6 = scmp.lt.u32.totalorder %s648_s8, %s915_s4 }
  0xe7   : > { %p636_p9 = pnand %p635_p8, %p974_p12 }
  0xe8   : > { %p641_p10 = por %p640_p3, %p639_p1 }
  0xe9   : > { %p637_p0 = pneg %p636_p9 }
  0xea   : > { %p643_p13 = por %p642_p6, %p641_p10 }
  0xec   : > { %p644_p7 = pnand %p643_p13, %p637_p0 }
  0xee   : > { %647 = shalt.err (!%p644_p7)
}
  0xef   : > { %s694_s22 = smov 128   ;;  %s695_s27 = smov 8  }
  0xf0   : > { %538 = dma.vmem_to_hbm [thread:$0]  (%p974_p12), %s917_s30, 2048, %s915_s4, %s420_s5, %s694_s22, %s694_s22, %s695_s27  }
  0xf1 PF: > { %s449_s16 = sand.u32 1, %s675_s12   ;;  %p975_p11 = scmp.ne.s32.totalorder %s970_s26, 0 }
  0xf2   : > { %p976_p2 = scmp.ge.s32.totalorder %s687_s15, 2  ;;  %s450_s28 = scalar_lea.sflag [#allocation4], %s449_s16 }
  0xf4   : > { %p545_p5 = pnand %p976_p2, %p975_p11 }
  0xf6   : > { %670 = dma.done.wait (!%p545_p5), %s450_s28, 2048  }
  0xf7   : > { %672 = vsyncadd (!%p545_p5), %s450_s28, 4294965248  ;;  %p16_p4 = scmp.ge.s32.totalorder %s741_s18, 4   ;;  %s977_s12 = smov %s679_s13 }
  0xf8   : > { %s978_s13 = smov %s683_s14  ;;  %s979_s14 = smov %s757_s23 }
  0xf9   : > { %s980_s15 = smov %s741_s18  ;;  %18 = sbr.rel (!%p16_p4) target bundleno = 5 (0x5), region = 80 }
 0x100   :  { %455 = vsyncpa [#allocation3], 1 }
 0x101   :  { %457 = vsyncpa [#allocation3 + $0x1], 1 }
 0x102   :  { %458 = vsyncpa [#allocation4], 1 }
 0x103   :  { %460 = vsyncpa [#allocation4 + $0x1], 1 }

</bundles_post_ra>
